<compile_context>
chip_gen: v7x
topology: tpu7x:2x2x1
jax: 0.10.0
libtpu: 0.0.40
codegen_flags: <defaults>
</compile_context>

<pallas_src>
import functools

import jax
import jax.numpy as jnp
import numpy as np
from jax import lax
from jax.experimental import pallas as pl
from jax.experimental.pallas import tpu as pltpu


def _lstm_recurrence_kernel(gx_ref, whh_ref, hT_ref, h_sc, c_sc, *,
                            seq_len, chunk_len, hidden, needs_mask, unroll):
    """One grid step = one (batch_chunk, time_chunk).

    gx_ref : (Tc, Bb, 4H) precomputed input projection x_t @ W_ih^T + b (time-major)
    whh_ref: (H, 4H)      recurrent weights, transposed, PyTorch gate order [i,f,g,o]
    hT_ref : (Bb, H)      output: final hidden state h_T for this batch chunk
    h_sc/c_sc: (Bb, H)    VMEM-resident LSTM state, persists across time chunks
    """
    c_idx = pl.program_id(1)
    H = hidden

    @pl.when(c_idx == 0)
    def _():
        h_sc[...] = jnp.zeros_like(h_sc)   # matches __init__hidden zeros
        c_sc[...] = jnp.zeros_like(c_sc)

    whh = whh_ref[...]                     # hoisted: loaded once per chunk

    def step(i, carry):
        h, c = carry
        # Single (Bb,H)x(H,4H) MXU matmul per time step; input proj. was hoisted.
        gates = (jnp.dot(h, whh, preferred_element_type=jnp.float32)
                 + gx_ref[i])
        i_g = jax.nn.sigmoid(gates[:, 0 * H:1 * H])
        f_g = jax.nn.sigmoid(gates[:, 1 * H:2 * H])
        g_g = jnp.tanh(gates[:, 2 * H:3 * H])
        o_g = jax.nn.sigmoid(gates[:, 3 * H:4 * H])
        c_new = f_g * c + i_g * g_g
        h_new = o_g * jnp.tanh(c_new)
        if needs_mask:                     # only present when T was padded
            valid = (c_idx * chunk_len + i) < seq_len
            h_new = jnp.where(valid, h_new, h)
            c_new = jnp.where(valid, c_new, c)
        return (h_new, c_new)

    h, c = lax.fori_loop(0, chunk_len, step, (h_sc[...], c_sc[...]),
                         unroll=unroll)
    h_sc[...] = h
    c_sc[...] = c

    @pl.when(c_idx == pl.num_programs(1) - 1)
    def _():
        hT_ref[...] = h_sc[...]


def lstm_final_hidden_pallas(gates_x, w_hh_T, *, chunk_len=None):
    """gates_x: (B, T, 4H) f32 = emb @ W_ih^T + (b_ih + b_hh). Returns h_T: (B, H)."""
    B, T, four_h = gates_x.shape
    H = w_hh_T.shape[0]
    assert four_h == 4 * H

    # Batch: pad to a multiple of 8 sublanes; split into <=128-row blocks so the
    # "parallel" batch grid axis can shard across v7x's two TensorCores.
    if B <= 128:
        B_pad = max(8, -(-B // 8) * 8)
        Bb = B_pad
    else:
        B_pad = -(-B // 128) * 128
        Bb = 128

    # Time: chunked in-kernel loop instead of one grid step per token.
    Tc = chunk_len or min(T, 128)
    n_chunks = -(-T // Tc)
    T_pad = n_chunks * Tc
    unroll = True if Tc <= 16 else 8

    # Time-major layout so each step reads a lane-dense (Bb, 4H) leading-axis slice.
    gx = jnp.transpose(gates_x, (1, 0, 2))                       # (T, B, 4H)
    gx = jnp.pad(gx, ((0, T_pad - T), (0, B_pad - B), (0, 0)))   # (T_pad, B_pad, 4H)

    kernel = functools.partial(
        _lstm_recurrence_kernel,
        seq_len=T, chunk_len=Tc, hidden=H,
        needs_mask=(T_pad != T), unroll=unroll)

    h_T = pl.pallas_call(
        kernel,
        out_shape=jax.ShapeDtypeStruct((B_pad, H), jnp.float32),
        grid_spec=pltpu.PrefetchScalarGridSpec(
            num_scalar_prefetch=0,
            grid=(B_pad // Bb, n_chunks),
            in_specs=[
                pl.BlockSpec((Tc, Bb, four_h), lambda b, c: (c, b, 0)),  # gates_x chunk
                pl.BlockSpec((H, four_h), lambda b, c: (0, 0)),          # W_hh^T
            ],
            out_specs=pl.BlockSpec((Bb, H), lambda b, c: (b, 0)),        # h_T
            scratch_shapes=[
                pltpu.VMEM((Bb, H), jnp.float32),   # h state
                pltpu.VMEM((Bb, H), jnp.float32),   # c state
            ],
        ),
        compiler_params=pltpu.CompilerParams(
            # batch is embarrassingly parallel (megacore), time is a recurrence
            dimension_semantics=("parallel", "arbitrary"),
        ),
    )(gx, w_hh_T)
    return h_T[:B]


def model_forward(x_ids, params):
    # Embedding lookup (frozen table) — glue, plain JAX.
    emb = jnp.take(params["embedding"], x_ids, axis=0)            # (B, T, E)
    B, T, E = emb.shape
    # Hoisted input projection: ONE large matmul outside the recurrence.
    gates_x = (emb.reshape(B * T, E) @ params["w_ih_T"]
               + params["b"]).reshape(B, T, -1)                   # (B, T, 4H)
    # Recurrence (the only sequential part) runs in the Pallas kernel.
    h_T = lstm_final_hidden_pallas(gates_x, params["w_hh_T"])     # (B, H)
    # Output Linear(hidden_size, 1) applied to h_n[-1] — glue, plain JAX.
    return h_T @ params["w_out_T"] + params["b_out"]              # (B, 1)


def reference_forward(x_ids, params):
    """Pure-JAX reference (lax.scan LSTM) for correctness check."""
    emb = jnp.take(params["embedding"], x_ids, axis=0)
    B = emb.shape[0]
    H = params["w_hh_T"].shape[0]

    def step(carry, xt):
        h, c = carry
        gates = xt @ params["w_ih_T"] + h @ params["w_hh_T"] + params["b"]
        i = jax.nn.sigmoid(gates[:, 0 * H:1 * H])
        f = jax.nn.sigmoid(gates[:, 1 * H:2 * H])
        g = jnp.tanh(gates[:, 2 * H:3 * H])
        o = jax.nn.sigmoid(gates[:, 3 * H:4 * H])
        c = f * c + i * g
        h = o * jnp.tanh(c)
        return (h, c), None

    h0 = jnp.zeros((B, H), jnp.float32)
    c0 = jnp.zeros((B, H), jnp.float32)
    (h_T, _), _ = jax.lax.scan(step, (h0, c0), jnp.swapaxes(emb, 0, 1))
    return h_T @ params["w_out_T"] + params["b_out"]


if __name__ == "__main__":
    # Small, module-consistent shapes.
    batch_size = 2
    seq_len = 8
    vocab_size = 50
    embedding_dimensions = 32
    hidden_size = 32
    pad_index = 0

    key = jax.random.PRNGKey(0)
    k_emb, k_ih, k_hh, k_bih, k_bhh, k_wo, k_bo, k_x = jax.random.split(key, 8)

    # Deterministic parameter init (synthetic; shapes match the nn.Module).
    embedding_matrix = jax.random.normal(
        k_emb, (vocab_size, embedding_dimensions), jnp.float32) * 0.1
    # PyTorch LSTM weights: weight_ih (4H, E), weight_hh (4H, H); stored transposed.
    w_ih = jax.random.normal(k_ih, (4 * hidden_size, embedding_dimensions),
                             jnp.float32) * 0.1
    w_hh = jax.random.normal(k_hh, (4 * hidden_size, hidden_size),
                             jnp.float32) * 0.1
    b_ih = jax.random.normal(k_bih, (4 * hidden_size,), jnp.float32) * 0.1
    b_hh = jax.random.normal(k_bhh, (4 * hidden_size,), jnp.float32) * 0.1
    w_out = jax.random.normal(k_wo, (1, hidden_size), jnp.float32) * 0.1
    b_out = jax.random.normal(k_bo, (1,), jnp.float32) * 0.1

    params = {
        "embedding": embedding_matrix,
        "w_ih_T": w_ih.T,                                # (E, 4H)
        "w_hh_T": w_hh.T,                                # (H, 4H)
        "b": (b_ih + b_hh).reshape(1, 4 * hidden_size),  # (1, 4H)
        "w_out_T": w_out.T,                              # (H, 1)
        "b_out": b_out.reshape(1, 1),                    # (1, 1)
    }

    x_ids = jax.random.randint(k_x, (batch_size, seq_len), 0, vocab_size,
                               dtype=jnp.int32)

    out = jax.block_until_ready(model_forward(x_ids, params))
    ref = jax.block_until_ready(reference_forward(x_ids, params))

    assert out.shape == (batch_size, 1)
    np.testing.assert_allclose(np.asarray(out), np.asarray(ref),
                               rtol=1e-5, atol=1e-5)
    print("KERNEL_OK")
</pallas_src>

<mosaic_0001>
module attributes {stable_mosaic.version = 11 : i64} {
  func.func @_lstm_recurrence_kernel(%arg0: i32, %arg1: i32, %arg2: memref<8x8x128xf32, #tpu.memory_space<vmem>>, %arg3: memref<32x128xf32, #tpu.memory_space<vmem>>, %arg4: memref<8x32xf32, #tpu.memory_space<vmem>>, %arg5: memref<8x32xf32, #tpu.memory_space<vmem>>, %arg6: memref<8x32xf32, #tpu.memory_space<vmem>>) attributes {dimension_semantics = [#tpu.dimension_semantics<parallel>, #tpu.dimension_semantics<arbitrary>], iteration_bounds = array<i64: 1, 1>, scalar_prefetch = 0 : i64, scratch_operands = 2 : i64, tpu.core_type = #tpu.core_type<tc>, window_params = [{transform_indices = @transform_0, window_bounds = array<i64: 8, 8, 128>}, {pipeline_mode = #tpu.pipeline_mode<synchronous>, transform_indices = @transform_1, window_bounds = array<i64: 32, 128>}, {transform_indices = @transform_2, window_bounds = array<i64: 8, 32>}]} {
    %c0_i32 = arith.constant 0 : i32
    %0 = arith.cmpi eq, %arg1, %c0_i32 : i32
    %1 = arith.extui %0 : i1 to i32
    %c0_i32_0 = arith.constant 0 : i32
    %2 = arith.cmpi ne, %1, %c0_i32_0 : i32
    scf.if %2 {
      %cst_60 = arith.constant 0.000000e+00 : f32
      %251 = vector.broadcast %cst_60 : f32 to vector<8x32xf32>
      %c0_61 = arith.constant 0 : index
      %c0_62 = arith.constant 0 : index
      %252 = vector.load %arg5[%c0_61, %c0_62] : memref<8x32xf32, #tpu.memory_space<vmem>>, vector<8x32xf32>
      tpu.vector_store %arg5[%c0_61, %c0_62], %251 {strides = array<i32>} : memref<8x32xf32, #tpu.memory_space<vmem>>, vector<8x32xf32>,
      %cst_63 = arith.constant 0.000000e+00 : f32
      %253 = vector.broadcast %cst_63 : f32 to vector<8x32xf32>
      %c0_64 = arith.constant 0 : index
      %c0_65 = arith.constant 0 : index
      %254 = vector.load %arg6[%c0_64, %c0_65] : memref<8x32xf32, #tpu.memory_space<vmem>>, vector<8x32xf32>
      tpu.vector_store %arg6[%c0_64, %c0_65], %253 {strides = array<i32>} : memref<8x32xf32, #tpu.memory_space<vmem>>, vector<8x32xf32>,
    } else {
    }
    %c0 = arith.constant 0 : index
    %c0_1 = arith.constant 0 : index
    %3 = vector.load %arg3[%c0, %c0_1] : memref<32x128xf32, #tpu.memory_space<vmem>>, vector<32x128xf32>
    %c0_2 = arith.constant 0 : index
    %c0_3 = arith.constant 0 : index
    %4 = vector.load %arg5[%c0_2, %c0_3] : memref<8x32xf32, #tpu.memory_space<vmem>>, vector<8x32xf32>
    %c0_4 = arith.constant 0 : index
    %c0_5 = arith.constant 0 : index
    %5 = vector.load %arg6[%c0_4, %c0_5] : memref<8x32xf32, #tpu.memory_space<vmem>>, vector<8x32xf32>
    %c0_i32_6 = arith.constant 0 : i32
    %cst = arith.constant dense<0.000000e+00> : vector<8x128xf32>
    %6 = tpu.matmul %4, %3, %cst {dimension_numbers = #tpu.dot_dimension_numbers<[1], [0], [0], [1], [0, 0, 1, 1], [], []>} : vector<8x32xf32>, vector<32x128xf32>, vector<8x128xf32> -> vector<8x128xf32>
    %7 = arith.index_cast %c0_i32_6 : i32 to index
    %c0_7 = arith.constant 0 : index
    %c0_8 = arith.constant 0 : index
    %8 = vector.load %arg2[%7, %c0_7, %c0_8] : memref<8x8x128xf32, #tpu.memory_space<vmem>>, vector<1x8x128xf32>
    %9 = vector.shape_cast %8 : vector<1x8x128xf32> to vector<8x128xf32>
    %10 = arith.addf %6, %9 : vector<8x128xf32>
    %11 = vector.extract_strided_slice %10 {offsets = [0, 0], sizes = [8, 32], strides = [1, 1]} : vector<8x128xf32> to vector<8x32xf32>
    %12 = arith.negf %11 : vector<8x32xf32>
    %13 = math.exp %12 : vector<8x32xf32>
    %cst_9 = arith.constant 1.000000e+00 : f32
    %14 = vector.broadcast %cst_9 : f32 to vector<8x32xf32>
    %15 = arith.addf %14, %13 : vector<8x32xf32>
    %16 = arith.divf %14, %15 : vector<8x32xf32>
    %17 = vector.extract_strided_slice %10 {offsets = [0, 32], sizes = [8, 32], strides = [1, 1]} : vector<8x128xf32> to vector<8x32xf32>
    %18 = arith.negf %17 : vector<8x32xf32>
    %19 = math.exp %18 : vector<8x32xf32>
    %cst_10 = arith.constant 1.000000e+00 : f32
    %20 = vector.broadcast %cst_10 : f32 to vector<8x32xf32>
    %21 = arith.addf %20, %19 : vector<8x32xf32>
    %22 = arith.divf %20, %21 : vector<8x32xf32>
    %23 = vector.extract_strided_slice %10 {offsets = [0, 64], sizes = [8, 32], strides = [1, 1]} : vector<8x128xf32> to vector<8x32xf32>
    %24 = math.tanh %23 : vector<8x32xf32>
    %25 = vector.extract_strided_slice %10 {offsets = [0, 96], sizes = [8, 32], strides = [1, 1]} : vector<8x128xf32> to vector<8x32xf32>
    %26 = arith.negf %25 : vector<8x32xf32>
    %27 = math.exp %26 : vector<8x32xf32>
    %cst_11 = arith.constant 1.000000e+00 : f32
    %28 = vector.broadcast %cst_11 : f32 to vector<8x32xf32>
    %29 = arith.addf %28, %27 : vector<8x32xf32>
    %30 = arith.divf %28, %29 : vector<8x32xf32>
    %31 = arith.mulf %22, %5 : vector<8x32xf32>
    %32 = arith.mulf %16, %24 : vector<8x32xf32>
    %33 = arith.addf %31, %32 : vector<8x32xf32>
    %34 = math.tanh %33 : vector<8x32xf32>
    %35 = arith.mulf %30, %34 : vector<8x32xf32>
    %c1_i32 = arith.constant 1 : i32
    %cst_12 = arith.constant dense<0.000000e+00> : vector<8x128xf32>
    %36 = tpu.matmul %35, %3, %cst_12 {dimension_numbers = #tpu.dot_dimension_numbers<[1], [0], [0], [1], [0, 0, 1, 1], [], []>} : vector<8x32xf32>, vector<32x128xf32>, vector<8x128xf32> -> vector<8x128xf32>
    %37 = arith.index_cast %c1_i32 : i32 to index
    %c0_13 = arith.constant 0 : index
    %c0_14 = arith.constant 0 : index
    %38 = vector.load %arg2[%37, %c0_13, %c0_14] : memref<8x8x128xf32, #tpu.memory_space<vmem>>, vector<1x8x128xf32>
    %39 = vector.shape_cast %38 : vector<1x8x128xf32> to vector<8x128xf32>
    %40 = arith.addf %36, %39 : vector<8x128xf32>
    %41 = vector.extract_strided_slice %40 {offsets = [0, 0], sizes = [8, 32], strides = [1, 1]} : vector<8x128xf32> to vector<8x32xf32>
    %42 = arith.negf %41 : vector<8x32xf32>
    %43 = math.exp %42 : vector<8x32xf32>
    %cst_15 = arith.constant 1.000000e+00 : f32
    %44 = vector.broadcast %cst_15 : f32 to vector<8x32xf32>
    %45 = arith.addf %44, %43 : vector<8x32xf32>
    %46 = arith.divf %44, %45 : vector<8x32xf32>
    %47 = vector.extract_strided_slice %40 {offsets = [0, 32], sizes = [8, 32], strides = [1, 1]} : vector<8x128xf32> to vector<8x32xf32>
    %48 = arith.negf %47 : vector<8x32xf32>
    %49 = math.exp %48 : vector<8x32xf32>
    %cst_16 = arith.constant 1.000000e+00 : f32
    %50 = vector.broadcast %cst_16 : f32 to vector<8x32xf32>
    %51 = arith.addf %50, %49 : vector<8x32xf32>
    %52 = arith.divf %50, %51 : vector<8x32xf32>
    %53 = vector.extract_strided_slice %40 {offsets = [0, 64], sizes = [8, 32], strides = [1, 1]} : vector<8x128xf32> to vector<8x32xf32>
    %54 = math.tanh %53 : vector<8x32xf32>
    %55 = vector.extract_strided_slice %40 {offsets = [0, 96], sizes = [8, 32], strides = [1, 1]} : vector<8x128xf32> to vector<8x32xf32>
    %56 = arith.negf %55 : vector<8x32xf32>
    %57 = math.exp %56 : vector<8x32xf32>
    %cst_17 = arith.constant 1.000000e+00 : f32
    %58 = vector.broadcast %cst_17 : f32 to vector<8x32xf32>
    %59 = arith.addf %58, %57 : vector<8x32xf32>
    %60 = arith.divf %58, %59 : vector<8x32xf32>
    %61 = arith.mulf %52, %33 : vector<8x32xf32>
    %62 = arith.mulf %46, %54 : vector<8x32xf32>
    %63 = arith.addf %61, %62 : vector<8x32xf32>
    %64 = math.tanh %63 : vector<8x32xf32>
    %65 = arith.mulf %60, %64 : vector<8x32xf32>
    %c2_i32 = arith.constant 2 : i32
    %cst_18 = arith.constant dense<0.000000e+00> : vector<8x128xf32>
    %66 = tpu.matmul %65, %3, %cst_18 {dimension_numbers = #tpu.dot_dimension_numbers<[1], [0], [0], [1], [0, 0, 1, 1], [], []>} : vector<8x32xf32>, vector<32x128xf32>, vector<8x128xf32> -> vector<8x128xf32>
    %67 = arith.index_cast %c2_i32 : i32 to index
    %c0_19 = arith.constant 0 : index
    %c0_20 = arith.constant 0 : index
    %68 = vector.load %arg2[%67, %c0_19, %c0_20] : memref<8x8x128xf32, #tpu.memory_space<vmem>>, vector<1x8x128xf32>
    %69 = vector.shape_cast %68 : vector<1x8x128xf32> to vector<8x128xf32>
    %70 = arith.addf %66, %69 : vector<8x128xf32>
    %71 = vector.extract_strided_slice %70 {offsets = [0, 0], sizes = [8, 32], strides = [1, 1]} : vector<8x128xf32> to vector<8x32xf32>
    %72 = arith.negf %71 : vector<8x32xf32>
    %73 = math.exp %72 : vector<8x32xf32>
    %cst_21 = arith.constant 1.000000e+00 : f32
    %74 = vector.broadcast %cst_21 : f32 to vector<8x32xf32>
    %75 = arith.addf %74, %73 : vector<8x32xf32>
    %76 = arith.divf %74, %75 : vector<8x32xf32>
    %77 = vector.extract_strided_slice %70 {offsets = [0, 32], sizes = [8, 32], strides = [1, 1]} : vector<8x128xf32> to vector<8x32xf32>
    %78 = arith.negf %77 : vector<8x32xf32>
    %79 = math.exp %78 : vector<8x32xf32>
    %cst_22 = arith.constant 1.000000e+00 : f32
    %80 = vector.broadcast %cst_22 : f32 to vector<8x32xf32>
    %81 = arith.addf %80, %79 : vector<8x32xf32>
    %82 = arith.divf %80, %81 : vector<8x32xf32>
    %83 = vector.extract_strided_slice %70 {offsets = [0, 64], sizes = [8, 32], strides = [1, 1]} : vector<8x128xf32> to vector<8x32xf32>
    %84 = math.tanh %83 : vector<8x32xf32>
    %85 = vector.extract_strided_slice %70 {offsets = [0, 96], sizes = [8, 32], strides = [1, 1]} : vector<8x128xf32> to vector<8x32xf32>
    %86 = arith.negf %85 : vector<8x32xf32>
    %87 = math.exp %86 : vector<8x32xf32>
    %cst_23 = arith.constant 1.000000e+00 : f32
    %88 = vector.broadcast %cst_23 : f32 to vector<8x32xf32>
    %89 = arith.addf %88, %87 : vector<8x32xf32>
    %90 = arith.divf %88, %89 : vector<8x32xf32>
    %91 = arith.mulf %82, %63 : vector<8x32xf32>
    %92 = arith.mulf %76, %84 : vector<8x32xf32>
    %93 = arith.addf %91, %92 : vector<8x32xf32>
    %94 = math.tanh %93 : vector<8x32xf32>
    %95 = arith.mulf %90, %94 : vector<8x32xf32>
    %c3_i32 = arith.constant 3 : i32
    %cst_24 = arith.constant dense<0.000000e+00> : vector<8x128xf32>
    %96 = tpu.matmul %95, %3, %cst_24 {dimension_numbers = #tpu.dot_dimension_numbers<[1], [0], [0], [1], [0, 0, 1, 1], [], []>} : vector<8x32xf32>, vector<32x128xf32>, vector<8x128xf32> -> vector<8x128xf32>
    %97 = arith.index_cast %c3_i32 : i32 to index
    %c0_25 = arith.constant 0 : index
    %c0_26 = arith.constant 0 : index
    %98 = vector.load %arg2[%97, %c0_25, %c0_26] : memref<8x8x128xf32, #tpu.memory_space<vmem>>, vector<1x8x128xf32>
    %99 = vector.shape_cast %98 : vector<1x8x128xf32> to vector<8x128xf32>
    %100 = arith.addf %96, %99 : vector<8x128xf32>
    %101 = vector.extract_strided_slice %100 {offsets = [0, 0], sizes = [8, 32], strides = [1, 1]} : vector<8x128xf32> to vector<8x32xf32>
    %102 = arith.negf %101 : vector<8x32xf32>
    %103 = math.exp %102 : vector<8x32xf32>
    %cst_27 = arith.constant 1.000000e+00 : f32
    %104 = vector.broadcast %cst_27 : f32 to vector<8x32xf32>
    %105 = arith.addf %104, %103 : vector<8x32xf32>
    %106 = arith.divf %104, %105 : vector<8x32xf32>
    %107 = vector.extract_strided_slice %100 {offsets = [0, 32], sizes = [8, 32], strides = [1, 1]} : vector<8x128xf32> to vector<8x32xf32>
    %108 = arith.negf %107 : vector<8x32xf32>
    %109 = math.exp %108 : vector<8x32xf32>
    %cst_28 = arith.constant 1.000000e+00 : f32
    %110 = vector.broadcast %cst_28 : f32 to vector<8x32xf32>
    %111 = arith.addf %110, %109 : vector<8x32xf32>
    %112 = arith.divf %110, %111 : vector<8x32xf32>
    %113 = vector.extract_strided_slice %100 {offsets = [0, 64], sizes = [8, 32], strides = [1, 1]} : vector<8x128xf32> to vector<8x32xf32>
    %114 = math.tanh %113 : vector<8x32xf32>
    %115 = vector.extract_strided_slice %100 {offsets = [0, 96], sizes = [8, 32], strides = [1, 1]} : vector<8x128xf32> to vector<8x32xf32>
    %116 = arith.negf %115 : vector<8x32xf32>
    %117 = math.exp %116 : vector<8x32xf32>
    %cst_29 = arith.constant 1.000000e+00 : f32
    %118 = vector.broadcast %cst_29 : f32 to vector<8x32xf32>
    %119 = arith.addf %118, %117 : vector<8x32xf32>
    %120 = arith.divf %118, %119 : vector<8x32xf32>
    %121 = arith.mulf %112, %93 : vector<8x32xf32>
    %122 = arith.mulf %106, %114 : vector<8x32xf32>
    %123 = arith.addf %121, %122 : vector<8x32xf32>
    %124 = math.tanh %123 : vector<8x32xf32>
    %125 = arith.mulf %120, %124 : vector<8x32xf32>
    %c4_i32 = arith.constant 4 : i32
    %cst_30 = arith.constant dense<0.000000e+00> : vector<8x128xf32>
    %126 = tpu.matmul %125, %3, %cst_30 {dimension_numbers = #tpu.dot_dimension_numbers<[1], [0], [0], [1], [0, 0, 1, 1], [], []>} : vector<8x32xf32>, vector<32x128xf32>, vector<8x128xf32> -> vector<8x128xf32>
    %127 = arith.index_cast %c4_i32 : i32 to index
    %c0_31 = arith.constant 0 : index
    %c0_32 = arith.constant 0 : index
    %128 = vector.load %arg2[%127, %c0_31, %c0_32] : memref<8x8x128xf32, #tpu.memory_space<vmem>>, vector<1x8x128xf32>
    %129 = vector.shape_cast %128 : vector<1x8x128xf32> to vector<8x128xf32>
    %130 = arith.addf %126, %129 : vector<8x128xf32>
    %131 = vector.extract_strided_slice %130 {offsets = [0, 0], sizes = [8, 32], strides = [1, 1]} : vector<8x128xf32> to vector<8x32xf32>
    %132 = arith.negf %131 : vector<8x32xf32>
    %133 = math.exp %132 : vector<8x32xf32>
    %cst_33 = arith.constant 1.000000e+00 : f32
    %134 = vector.broadcast %cst_33 : f32 to vector<8x32xf32>
    %135 = arith.addf %134, %133 : vector<8x32xf32>
    %136 = arith.divf %134, %135 : vector<8x32xf32>
    %137 = vector.extract_strided_slice %130 {offsets = [0, 32], sizes = [8, 32], strides = [1, 1]} : vector<8x128xf32> to vector<8x32xf32>
    %138 = arith.negf %137 : vector<8x32xf32>
    %139 = math.exp %138 : vector<8x32xf32>
    %cst_34 = arith.constant 1.000000e+00 : f32
    %140 = vector.broadcast %cst_34 : f32 to vector<8x32xf32>
    %141 = arith.addf %140, %139 : vector<8x32xf32>
    %142 = arith.divf %140, %141 : vector<8x32xf32>
    %143 = vector.extract_strided_slice %130 {offsets = [0, 64], sizes = [8, 32], strides = [1, 1]} : vector<8x128xf32> to vector<8x32xf32>
    %144 = math.tanh %143 : vector<8x32xf32>
    %145 = vector.extract_strided_slice %130 {offsets = [0, 96], sizes = [8, 32], strides = [1, 1]} : vector<8x128xf32> to vector<8x32xf32>
    %146 = arith.negf %145 : vector<8x32xf32>
    %147 = math.exp %146 : vector<8x32xf32>
    %cst_35 = arith.constant 1.000000e+00 : f32
    %148 = vector.broadcast %cst_35 : f32 to vector<8x32xf32>
    %149 = arith.addf %148, %147 : vector<8x32xf32>
    %150 = arith.divf %148, %149 : vector<8x32xf32>
    %151 = arith.mulf %142, %123 : vector<8x32xf32>
    %152 = arith.mulf %136, %144 : vector<8x32xf32>
    %153 = arith.addf %151, %152 : vector<8x32xf32>
    %154 = math.tanh %153 : vector<8x32xf32>
    %155 = arith.mulf %150, %154 : vector<8x32xf32>
    %c5_i32 = arith.constant 5 : i32
    %cst_36 = arith.constant dense<0.000000e+00> : vector<8x128xf32>
    %156 = tpu.matmul %155, %3, %cst_36 {dimension_numbers = #tpu.dot_dimension_numbers<[1], [0], [0], [1], [0, 0, 1, 1], [], []>} : vector<8x32xf32>, vector<32x128xf32>, vector<8x128xf32> -> vector<8x128xf32>
    %157 = arith.index_cast %c5_i32 : i32 to index
    %c0_37 = arith.constant 0 : index
    %c0_38 = arith.constant 0 : index
    %158 = vector.load %arg2[%157, %c0_37, %c0_38] : memref<8x8x128xf32, #tpu.memory_space<vmem>>, vector<1x8x128xf32>
    %159 = vector.shape_cast %158 : vector<1x8x128xf32> to vector<8x128xf32>
    %160 = arith.addf %156, %159 : vector<8x128xf32>
    %161 = vector.extract_strided_slice %160 {offsets = [0, 0], sizes = [8, 32], strides = [1, 1]} : vector<8x128xf32> to vector<8x32xf32>
    %162 = arith.negf %161 : vector<8x32xf32>
    %163 = math.exp %162 : vector<8x32xf32>
    %cst_39 = arith.constant 1.000000e+00 : f32
    %164 = vector.broadcast %cst_39 : f32 to vector<8x32xf32>
    %165 = arith.addf %164, %163 : vector<8x32xf32>
    %166 = arith.divf %164, %165 : vector<8x32xf32>
    %167 = vector.extract_strided_slice %160 {offsets = [0, 32], sizes = [8, 32], strides = [1, 1]} : vector<8x128xf32> to vector<8x32xf32>
    %168 = arith.negf %167 : vector<8x32xf32>
    %169 = math.exp %168 : vector<8x32xf32>
    %cst_40 = arith.constant 1.000000e+00 : f32
    %170 = vector.broadcast %cst_40 : f32 to vector<8x32xf32>
    %171 = arith.addf %170, %169 : vector<8x32xf32>
    %172 = arith.divf %170, %171 : vector<8x32xf32>
    %173 = vector.extract_strided_slice %160 {offsets = [0, 64], sizes = [8, 32], strides = [1, 1]} : vector<8x128xf32> to vector<8x32xf32>
    %174 = math.tanh %173 : vector<8x32xf32>
    %175 = vector.extract_strided_slice %160 {offsets = [0, 96], sizes = [8, 32], strides = [1, 1]} : vector<8x128xf32> to vector<8x32xf32>
    %176 = arith.negf %175 : vector<8x32xf32>
    %177 = math.exp %176 : vector<8x32xf32>
    %cst_41 = arith.constant 1.000000e+00 : f32
    %178 = vector.broadcast %cst_41 : f32 to vector<8x32xf32>
    %179 = arith.addf %178, %177 : vector<8x32xf32>
    %180 = arith.divf %178, %179 : vector<8x32xf32>
    %181 = arith.mulf %172, %153 : vector<8x32xf32>
    %182 = arith.mulf %166, %174 : vector<8x32xf32>
    %183 = arith.addf %181, %182 : vector<8x32xf32>
    %184 = math.tanh %183 : vector<8x32xf32>
    %185 = arith.mulf %180, %184 : vector<8x32xf32>
    %c6_i32 = arith.constant 6 : i32
    %cst_42 = arith.constant dense<0.000000e+00> : vector<8x128xf32>
    %186 = tpu.matmul %185, %3, %cst_42 {dimension_numbers = #tpu.dot_dimension_numbers<[1], [0], [0], [1], [0, 0, 1, 1], [], []>} : vector<8x32xf32>, vector<32x128xf32>, vector<8x128xf32> -> vector<8x128xf32>
    %187 = arith.index_cast %c6_i32 : i32 to index
    %c0_43 = arith.constant 0 : index
    %c0_44 = arith.constant 0 : index
    %188 = vector.load %arg2[%187, %c0_43, %c0_44] : memref<8x8x128xf32, #tpu.memory_space<vmem>>, vector<1x8x128xf32>
    %189 = vector.shape_cast %188 : vector<1x8x128xf32> to vector<8x128xf32>
    %190 = arith.addf %186, %189 : vector<8x128xf32>
    %191 = vector.extract_strided_slice %190 {offsets = [0, 0], sizes = [8, 32], strides = [1, 1]} : vector<8x128xf32> to vector<8x32xf32>
    %192 = arith.negf %191 : vector<8x32xf32>
    %193 = math.exp %192 : vector<8x32xf32>
    %cst_45 = arith.constant 1.000000e+00 : f32
    %194 = vector.broadcast %cst_45 : f32 to vector<8x32xf32>
    %195 = arith.addf %194, %193 : vector<8x32xf32>
    %196 = arith.divf %194, %195 : vector<8x32xf32>
    %197 = vector.extract_strided_slice %190 {offsets = [0, 32], sizes = [8, 32], strides = [1, 1]} : vector<8x128xf32> to vector<8x32xf32>
    %198 = arith.negf %197 : vector<8x32xf32>
    %199 = math.exp %198 : vector<8x32xf32>
    %cst_46 = arith.constant 1.000000e+00 : f32
    %200 = vector.broadcast %cst_46 : f32 to vector<8x32xf32>
    %201 = arith.addf %200, %199 : vector<8x32xf32>
    %202 = arith.divf %200, %201 : vector<8x32xf32>
    %203 = vector.extract_strided_slice %190 {offsets = [0, 64], sizes = [8, 32], strides = [1, 1]} : vector<8x128xf32> to vector<8x32xf32>
    %204 = math.tanh %203 : vector<8x32xf32>
    %205 = vector.extract_strided_slice %190 {offsets = [0, 96], sizes = [8, 32], strides = [1, 1]} : vector<8x128xf32> to vector<8x32xf32>
    %206 = arith.negf %205 : vector<8x32xf32>
    %207 = math.exp %206 : vector<8x32xf32>
    %cst_47 = arith.constant 1.000000e+00 : f32
    %208 = vector.broadcast %cst_47 : f32 to vector<8x32xf32>
    %209 = arith.addf %208, %207 : vector<8x32xf32>
    %210 = arith.divf %208, %209 : vector<8x32xf32>
    %211 = arith.mulf %202, %183 : vector<8x32xf32>
    %212 = arith.mulf %196, %204 : vector<8x32xf32>
    %213 = arith.addf %211, %212 : vector<8x32xf32>
    %214 = math.tanh %213 : vector<8x32xf32>
    %215 = arith.mulf %210, %214 : vector<8x32xf32>
    %c7_i32 = arith.constant 7 : i32
    %cst_48 = arith.constant dense<0.000000e+00> : vector<8x128xf32>
    %216 = tpu.matmul %215, %3, %cst_48 {dimension_numbers = #tpu.dot_dimension_numbers<[1], [0], [0], [1], [0, 0, 1, 1], [], []>} : vector<8x32xf32>, vector<32x128xf32>, vector<8x128xf32> -> vector<8x128xf32>
    %217 = arith.index_cast %c7_i32 : i32 to index
    %c0_49 = arith.constant 0 : index
    %c0_50 = arith.constant 0 : index
    %218 = vector.load %arg2[%217, %c0_49, %c0_50] : memref<8x8x128xf32, #tpu.memory_space<vmem>>, vector<1x8x128xf32>
    %219 = vector.shape_cast %218 : vector<1x8x128xf32> to vector<8x128xf32>
    %220 = arith.addf %216, %219 : vector<8x128xf32>
    %221 = vector.extract_strided_slice %220 {offsets = [0, 0], sizes = [8, 32], strides = [1, 1]} : vector<8x128xf32> to vector<8x32xf32>
    %222 = arith.negf %221 : vector<8x32xf32>
    %223 = math.exp %222 : vector<8x32xf32>
    %cst_51 = arith.constant 1.000000e+00 : f32
    %224 = vector.broadcast %cst_51 : f32 to vector<8x32xf32>
    %225 = arith.addf %224, %223 : vector<8x32xf32>
    %226 = arith.divf %224, %225 : vector<8x32xf32>
    %227 = vector.extract_strided_slice %220 {offsets = [0, 32], sizes = [8, 32], strides = [1, 1]} : vector<8x128xf32> to vector<8x32xf32>
    %228 = arith.negf %227 : vector<8x32xf32>
    %229 = math.exp %228 : vector<8x32xf32>
    %cst_52 = arith.constant 1.000000e+00 : f32
    %230 = vector.broadcast %cst_52 : f32 to vector<8x32xf32>
    %231 = arith.addf %230, %229 : vector<8x32xf32>
    %232 = arith.divf %230, %231 : vector<8x32xf32>
    %233 = vector.extract_strided_slice %220 {offsets = [0, 64], sizes = [8, 32], strides = [1, 1]} : vector<8x128xf32> to vector<8x32xf32>
    %234 = math.tanh %233 : vector<8x32xf32>
    %235 = vector.extract_strided_slice %220 {offsets = [0, 96], sizes = [8, 32], strides = [1, 1]} : vector<8x128xf32> to vector<8x32xf32>
    %236 = arith.negf %235 : vector<8x32xf32>
    %237 = math.exp %236 : vector<8x32xf32>
    %cst_53 = arith.constant 1.000000e+00 : f32
    %238 = vector.broadcast %cst_53 : f32 to vector<8x32xf32>
    %239 = arith.addf %238, %237 : vector<8x32xf32>
    %240 = arith.divf %238, %239 : vector<8x32xf32>
    %241 = arith.mulf %232, %213 : vector<8x32xf32>
    %242 = arith.mulf %226, %234 : vector<8x32xf32>
    %243 = arith.addf %241, %242 : vector<8x32xf32>
    %244 = math.tanh %243 : vector<8x32xf32>
    %245 = arith.mulf %240, %244 : vector<8x32xf32>
    %c8_i32 = arith.constant 8 : i32
    %c0_54 = arith.constant 0 : index
    %c0_55 = arith.constant 0 : index
    %246 = vector.load %arg5[%c0_54, %c0_55] : memref<8x32xf32, #tpu.memory_space<vmem>>, vector<8x32xf32>
    tpu.vector_store %arg5[%c0_54, %c0_55], %245 {strides = array<i32>} : memref<8x32xf32, #tpu.memory_space<vmem>>, vector<8x32xf32>,
    %c0_56 = arith.constant 0 : index
    %c0_57 = arith.constant 0 : index
    %247 = vector.load %arg6[%c0_56, %c0_57] : memref<8x32xf32, #tpu.memory_space<vmem>>, vector<8x32xf32>
    tpu.vector_store %arg6[%c0_56, %c0_57], %243 {strides = array<i32>} : memref<8x32xf32, #tpu.memory_space<vmem>>, vector<8x32xf32>,
    %c0_i32_58 = arith.constant 0 : i32
    %248 = arith.cmpi eq, %arg1, %c0_i32_58 : i32
    %249 = arith.extui %248 : i1 to i32
    %c0_i32_59 = arith.constant 0 : i32
    %250 = arith.cmpi ne, %249, %c0_i32_59 : i32
    scf.if %250 {
      %c0_60 = arith.constant 0 : index
      %c0_61 = arith.constant 0 : index
      %251 = vector.load %arg5[%c0_60, %c0_61] : memref<8x32xf32, #tpu.memory_space<vmem>>, vector<8x32xf32>
      %c0_62 = arith.constant 0 : index
      %c0_63 = arith.constant 0 : index
      %252 = vector.load %arg4[%c0_62, %c0_63] : memref<8x32xf32, #tpu.memory_space<vmem>>, vector<8x32xf32>
      tpu.vector_store %arg4[%c0_62, %c0_63], %251 {strides = array<i32>} : memref<8x32xf32, #tpu.memory_space<vmem>>, vector<8x32xf32>,
    } else {
    }
    return
  }
  func.func @transform_0(%arg0: i32, %arg1: i32) -> (i32, i32, i32) {
    %c0_i32 = arith.constant 0 : i32
    %c0_i32_0 = arith.constant 0 : i32
    return %arg1, %arg0, %c0_i32 : i32, i32, i32
  }
  func.func @transform_1(%arg0: i32, %arg1: i32) -> (i32, i32) {
    %c0_i32 = arith.constant 0 : i32
    %c0_i32_0 = arith.constant 0 : i32
    %c0_i32_1 = arith.constant 0 : i32
    return %c0_i32, %c0_i32_0 : i32, i32
  }
  func.func @transform_2(%arg0: i32, %arg1: i32) -> (i32, i32) {
    %c0_i32 = arith.constant 0 : i32
    %c0_i32_0 = arith.constant 0 : i32
    return %arg0, %c0_i32 : i32, i32
  }
}

</mosaic_0001>

<bundles_post_ra>
// kernel: tpu_custom_call.1
= control target key start
LH: loop header
LB: loop body
LE: loop exit
PB: predicated region body
PF: predicated region fallthrough
CT: control target
= control target key end

     0   :  { %7 = vsyncpa [#allocation5], 0  ;;  %s1395_s0 = inlined_call_operand.hbm [shape: f32[8,8,128], index: 0, kind: input, shape index: {}]   ;;  %s1396_s1 = inlined_call_operand.hbm [shape: f32[32,128], index: 1, kind: input, shape index: {}]   ;;  %s1397_s2 = inlined_call_operand.hbm [shape: f32[8,32], index: 2, kind: output, shape index: {}]  }
   0x1   :  { %8 = vsyncpa [#allocation8], 0 }
   0x2   :  { %9 = vsyncpa [#allocation6], 0  ;;  %s1233_s9 = smov [#allocation4]   ;;  %s1161_s13 = scalar_lea.hbm %s1395_s0, 1024 }
   0x3   :  { %s15_s10 = sshll.u32 %s1233_s9, 4  ;;  %p1162_p0 = scmp.ne.s32.totalorder %s1395_s0, %s1161_s13  ;;  %s16_s10 = int_to_ptr.vmem [resolvable:$true] %s15_s10 }
   0x4   :  { %p1165_p1 = scmp.lt.u32.totalorder %s1161_s13, %s1395_s0 }
   0x6   :  { %p1167_p2 = pnand %p1165_p1, %p1162_p0 }
   0x8   :  { %1170 = shalt.err (!%p1167_p2)
}
   0x9   :  { %s1171_s18 = scalar_lea.vmem %s16_s10, 1024  ;;  %p1176_p4 = scmp.lt.s32.totalorder %s16_s10, %s16_s10 }
   0xa   :  { %p1172_p3 = scmp.ne.s32.totalorder %s16_s10, %s1171_s18  ;;  %p1177_p5 = scmp.lt.s32.totalorder %s1171_s18, %s1171_s18 }
   0xc   :  { %p1178_p6 = por %p1177_p5, %p1176_p4 }
   0xe   :  { %p1179_p7 = pnand %p1178_p6, %p1172_p3 }
  0x10   :  { %1182 = shalt.err (!%p1179_p7)
}
  0x11   :  { %s1234_s19 = smov 128   ;;  %s1235_s20 = smov 8  }
  0x12   :  { %21 = dma.hbm_to_vmem [thread:$0]  %s1395_s0, 1024, %s16_s10, [#allocation5], %s1234_s19, %s1234_s19, %s1235_s20  }
  0x13   :  { %s1236_s23 = smov [#allocation7]   ;;  %s1183_s27 = scalar_lea.hbm %s1396_s1, 512 }
  0x14   :  { %s27_s24 = sshll.u32 %s1236_s23, 4  ;;  %p1184_p8 = scmp.ne.s32.totalorder %s1396_s1, %s1183_s27  ;;  %s28_s24 = int_to_ptr.vmem [resolvable:$true] %s27_s24 }
  0x15   :  { %p1187_p9 = scmp.lt.u32.totalorder %s1183_s27, %s1396_s1 }
  0x17   :  { %p1189_p10 = pnand %p1187_p9, %p1184_p8 }
  0x19   :  { %1192 = shalt.err (!%p1189_p10)
}
  0x1a   :  { %s1193_s4 = scalar_lea.vmem %s28_s24, 512  ;;  %p1198_p12 = scmp.lt.s32.totalorder %s28_s24, %s28_s24 }
  0x1b   :  { %p1194_p11 = scmp.ne.s32.totalorder %s28_s24, %s1193_s4  ;;  %p1199_p13 = scmp.lt.s32.totalorder %s1193_s4, %s1193_s4 }
  0x1d   :  { %p1200_p0 = por %p1199_p13, %p1198_p12 }
  0x1f   :  { %p1201_p1 = pnand %p1200_p0, %p1194_p11 }
  0x21   :  { %1204 = shalt.err (!%p1201_p1)
}
  0x22   :  { %33 = dma.hbm_to_vmem [thread:$0]  %s1396_s1, 512, %s28_s24, [#allocation8], %s1234_s19, %s1234_s19, %s1235_s20  }
  0x23   :  { %1227 = dma.done.wait [#allocation5], 1024  }
  0x24   :  { %1228 = vsyncadd [#allocation5], 4294966272 }
  0x25   :  { %1229 = dma.done.wait [#allocation8], 512  }
  0x26   :  { %1230 = vsyncadd [#allocation8], 4294966784  ;;  %vm44_vm0 = vcmask 261120   ;;  %v1237_v0 = vmov 0.0|0.0   ;;  %vm1238_vm1 = vmmov 0   ;;  %v1239_v1 = vmov 0.0  }
  0x27   :  { %1038 = vmatprep.subr.bf16.mxu0 %v1237_v0  ;;  %958 = vmatprep.mubr.msk.f32.mxu0 %vm1238_vm1, %v1239_v1  ;;  %45 = vst.msk [vmem:[#allocation2] sm:$0xff] %vm44_vm0, %v1239_v1  ;;  %46 = vst.msk [vmem:[#allocation3] sm:$0xff] %vm44_vm0, %v1239_v1  ;;  %v47_v2 = vld [vmem:[#allocation7] sm:$0xff]  ;;  %v48_v3 = vld [vmem:[#allocation7 + $0x8] sm:$0xff]  ;;  %s1240_s1 = smov 64   ;;  %s1241_s6 = smov 32  }
  0x28   :  { %1044 = vmatprep.subr.bf16.mxu1 %v1237_v0  ;;  %969 = vmatprep.mubr.msk.f32.mxu1 %vm1238_vm1, %v1239_v1  ;;  %v49_v4 = vld [vmem:[#allocation7 + $0x10] sm:$0xff]  ;;  %v1293_v5 = vpack.c.bf16 %v48_v3, %v47_v2  ;;  %v50_v6 = vld [vmem:[#allocation7 + $0x18] sm:$0xff]  ;;  %v53_v9 = vld [vmem:[#allocation4] sm:$0xff]  ;;  %s1242_s7 = smov 96   ;;  %s1243_s8 = smov [#allocation9]  }
  0x29   :  { %v1296_v7 = vpack.c.bf16 %v50_v6, %v49_v4  ;;  %v157_v29 = vld [vmem:[#allocation4 + $0x8] sm:$0xff]  ;;  %v258_v47 = vld [vmem:[#allocation4 + $0x10] sm:$0xff]  ;;  %v359_v3 = vld [vmem:[#allocation4 + $0x18] sm:$0xff]  ;;  %s884_s9 = sshll.u32 %s1243_s8, 4  ;;  %s885_s9 = int_to_ptr.vmem [resolvable:$true] %s884_s9 }
  0x2a   :  { %1040 = vmatpush3.bf16.msra.mxu0 %v1293_v5  ;;  %1046 = vmatpush3.bf16.msra.mxu1 %v1293_v5  ;;  %s1205_s10 = scalar_lea.vmem %s885_s9, 128  ;;  %p1210_p3 = scmp.lt.s32.totalorder %s885_s9, %s885_s9 }
  0x2b   :  { %1041 = vmatprep.subr.bf16.mxu0 %v1237_v0  ;;  %1047 = vmatprep.subr.bf16.mxu1 %v1237_v0  ;;  %p1206_p2 = scmp.ne.s32.totalorder %s885_s9, %s1205_s10  ;;  %p1211_p4 = scmp.lt.s32.totalorder %s1205_s10, %s1205_s10 }
  0x2d   :  { %p1212_p5 = por %p1211_p4, %p1210_p3 }
  0x2e   :  { %1043 = vmatpush3.bf16.msra.mxu0 %v1296_v7  ;;  %v51_v8 = vld [vmem:[#allocation2] sm:$0xff]  ;;  %1049 = vmatpush3.bf16.msra.mxu1 %v1296_v7  ;;  %v52_v14 = vld [vmem:[#allocation3] sm:$0xff] }
  0x2f   :  { %1050 = vmatprep.subr.bf16.mxu0 %v1237_v0  ;;  %1056 = vmatprep.subr.bf16.mxu1 %v1237_v0  ;;  %p1213_p6 = pnand %p1212_p5, %p1206_p2 }
  0x31   :  { %959 = vmatmul.mubr.msk.f32.vlgmr.msra.gmra.mrb[0].mxu0 %vm44_vm0, %v51_v8 }
  0x32   :  { %1052 = vmatpush3.bf16.msra.mxu0 %v1293_v5  ;;  %980 = vmatprep.mubr.msk.f32.mxu0 %vm1238_vm1, %v1239_v1 }
  0x33   :  { %1053 = vmatprep.subr.bf16.mxu0 %v1237_v0 }
  0x36   :  { %1055 = vmatpush3.bf16.msra.mxu0 %v1296_v7 }
  0x37   :  { %1062 = vmatprep.subr.bf16.mxu0 %v1237_v0 }
 0x104   :  { %v124_v10 = vpop.f32.mrb[0].mxu0 }
 0x105   :  { %v125_v11 = vadd.f32 %v124_v10, %v53_v9  ;;  %v960_v12 = vpop.f32.mrb[1].mxu0 }
 0x107   :  { %1097 = vtanh.f32 %v125_v11  ;;  %v895_v15 = vmul.f32 -1.442695, %v125_v11 }
 0x109   :  { %1099 = vpow2.f32 %v895_v15 }
 0x111   :  { %v1098_v13 = vpop.eup %1097 }
 0x112   :  { %141 = vrot.lane.b32.xlu0 %v1098_v13, %s1240_s1 }
 0x113   :  { %v1100_v16 = vpop.eup %1099 }
 0x114   :  { %v131_v17 = vadd.f32 1.0, %v1100_v16 }
 0x116   :  { %136 = vrot.lane.b32.xlu0 %v52_v14, %s1241_s6  ;;  %1101 = vrcp.f32 %v131_v17 }
 0x120   :  { %v1102_v18 = vpop.eup %1101 }
 0x184   :  { %v142_v19 = vpop.permute.xlu0 %141 }
 0x185   :  { %v144_v20 = vmul.f32 %v1102_v18, %v142_v19 }
 0x187   :  { %146 = vrot.lane.b32.xlu1 %v144_v20, %s1241_s6 }
 0x188   :  { %v137_v21 = vpop.permute.xlu0 %136 }
 0x189   :  { %v139_v22 = vmul.f32 %v1102_v18, %v137_v21 }
 0x1f9   :  { %v147_v23 = vpop.permute.xlu1 %146 }
 0x1fa   :  { %v149_v24 = vadd.f32 %v147_v23, %v139_v22  ;;  %v460_v23 = vld [vmem:[#allocation4 + $0x20] sm:$0xff] }
 0x1fc   :  { %1103 = vtanh.f32 %v149_v24 }
 0x206   :  { %v1104_v25 = vpop.eup %1103 }
 0x207   :  { %152 = vrot.lane.b32.xlu1 %v1104_v25, %s1240_s1 }
 0x279   :  { %v153_v26 = vpop.permute.xlu1 %152 }
 0x27a   :  { %v155_v27 = vmul.f32 %v1102_v18, %v153_v26 }
 0x27c   :  { %159 = vrot.lane.b32.xlu0 %v155_v27, %s1241_s6 }
 0x2ee   :  { %v160_v28 = vpop.permute.xlu0 %159 }
 0x2ef   :  { %970 = vmatmul.mubr.msk.f32.vlgmr.msra.gmra.mrb[0].mxu1 %vm44_vm0, %v160_v28 }
 0x2f0   :  { %1058 = vmatpush3.bf16.msra.mxu1 %v1293_v5  ;;  %991 = vmatprep.mubr.msk.f32.mxu1 %vm1238_vm1, %v1239_v1 }
 0x2f1   :  { %1059 = vmatprep.subr.bf16.mxu1 %v1237_v0 }
 0x2f4   :  { %1061 = vmatpush3.bf16.msra.mxu1 %v1296_v7 }
 0x2f5   :  { %1068 = vmatprep.subr.bf16.mxu1 %v1237_v0 }
 0x3c2   :  { %v229_v30 = vpop.f32.mrb[0].mxu1 }
 0x3c3   :  { %v230_v31 = vadd.f32 %v229_v30, %v157_v29  ;;  %v971_v32 = vpop.f32.mrb[1].mxu1 }
 0x3c5   :  { %1105 = vtanh.f32 %v230_v31  ;;  %v897_v34 = vmul.f32 -1.442695, %v230_v31 }
 0x3c7   :  { %1107 = vpow2.f32 %v897_v34 }
 0x3cf   :  { %v1106_v33 = vpop.eup %1105 }
 0x3d0   :  { %242 = vrot.lane.b32.xlu1 %v1106_v33, %s1240_s1 }
 0x3d1   :  { %v1108_v35 = vpop.eup %1107 }
 0x3d2   :  { %v236_v36 = vadd.f32 1.0, %v1108_v35 }
 0x3d4   :  { %1109 = vrcp.f32 %v236_v36 }
 0x3de   :  { %v1110_v37 = vpop.eup %1109 }
 0x3df   :  { %v240_v40 = vmul.f32 %v1110_v37, %v149_v24 }
 0x442   :  { %v243_v38 = vpop.permute.xlu1 %242 }
 0x443   :  { %v245_v39 = vmul.f32 %v1110_v37, %v243_v38 }
 0x445   :  { %247 = vrot.lane.b32.xlu0 %v245_v39, %s1241_s6 }
 0x4b7   :  { %v248_v41 = vpop.permute.xlu0 %247 }
 0x4b8   :  { %v250_v42 = vadd.f32 %v248_v41, %v240_v40  ;;  %v561_v41 = vld [vmem:[#allocation4 + $0x28] sm:$0xff] }
 0x4ba   :  { %1111 = vtanh.f32 %v250_v42 }
 0x4c4   :  { %v1112_v43 = vpop.eup %1111 }
 0x4c5   :  { %253 = vrot.lane.b32.xlu1 %v1112_v43, %s1240_s1 }
 0x537   :  { %v254_v44 = vpop.permute.xlu1 %253 }
 0x538   :  { %v256_v45 = vmul.f32 %v1110_v37, %v254_v44 }
 0x53a   :  { %260 = vrot.lane.b32.xlu0 %v256_v45, %s1241_s6 }
 0x5ac   :  { %v261_v46 = vpop.permute.xlu0 %260 }
 0x5ad   :  { %981 = vmatmul.mubr.msk.f32.vlgmr.msra.gmra.mrb[2].mxu0 %vm44_vm0, %v261_v46 }
 0x5ae   :  { %1064 = vmatpush3.bf16.msra.mxu0 %v1293_v5  ;;  %1002 = vmatprep.mubr.msk.f32.mxu0 %vm1238_vm1, %v1239_v1 }
 0x5af   :  { %1065 = vmatprep.subr.bf16.mxu0 %v1237_v0 }
 0x5b2   :  { %1067 = vmatpush3.bf16.msra.mxu0 %v1296_v7 }
 0x5b3   :  { %1074 = vmatprep.subr.bf16.mxu0 %v1237_v0 }
 0x680   :  { %v330_v48 = vpop.f32.mrb[2].mxu0 }
 0x681   :  { %v331_v49 = vadd.f32 %v330_v48, %v258_v47  ;;  %v982_v50 = vpop.f32.mrb[3].mxu0 }
 0x683   :  { %1113 = vtanh.f32 %v331_v49  ;;  %v899_v52 = vmul.f32 -1.442695, %v331_v49 }
 0x685   :  { %1115 = vpow2.f32 %v899_v52 }
 0x68d   :  { %v1114_v51 = vpop.eup %1113 }
 0x68e   :  { %343 = vrot.lane.b32.xlu1 %v1114_v51, %s1240_s1 }
 0x68f   :  { %v1116_v53 = vpop.eup %1115 }
 0x690   :  { %v337_v54 = vadd.f32 1.0, %v1116_v53 }
 0x692   :  { %1117 = vrcp.f32 %v337_v54 }
 0x69c   :  { %v1118_v55 = vpop.eup %1117 }
 0x69d   :  { %v341_v58 = vmul.f32 %v1118_v55, %v250_v42 }
 0x700   :  { %v344_v56 = vpop.permute.xlu1 %343 }
 0x701   :  { %v346_v57 = vmul.f32 %v1118_v55, %v344_v56 }
 0x703   :  { %348 = vrot.lane.b32.xlu0 %v346_v57, %s1241_s6 }
 0x775   :  { %v349_v59 = vpop.permute.xlu0 %348 }
 0x776   :  { %v351_v60 = vadd.f32 %v349_v59, %v341_v58 }
 0x778   :  { %1119 = vtanh.f32 %v351_v60 }
 0x782   :  { %v1120_v61 = vpop.eup %1119 }
 0x783   :  { %354 = vrot.lane.b32.xlu1 %v1120_v61, %s1240_s1 }
 0x7f5   :  { %v355_v62 = vpop.permute.xlu1 %354 }
 0x7f6   :  { %v357_v63 = vmul.f32 %v1118_v55, %v355_v62  ;;  %v662_v55 = vld [vmem:[#allocation4 + $0x30] sm:$0xff] }
 0x7f8   :  { %361 = vrot.lane.b32.xlu0 %v357_v63, %s1241_s6 }
 0x86a   :  { %v362_v2 = vpop.permute.xlu0 %361 }
 0x86b   :  { %992 = vmatmul.mubr.msk.f32.vlgmr.msra.gmra.mrb[2].mxu1 %vm44_vm0, %v362_v2 }
 0x86c   :  { %1070 = vmatpush3.bf16.msra.mxu1 %v1293_v5  ;;  %1013 = vmatprep.mubr.msk.f32.mxu1 %vm1238_vm1, %v1239_v1 }
 0x86d   :  { %1071 = vmatprep.subr.bf16.mxu1 %v1237_v0 }
 0x870   :  { %1073 = vmatpush3.bf16.msra.mxu1 %v1296_v7 }
 0x871   :  { %1080 = vmatprep.subr.bf16.mxu1 %v1237_v0 }
 0x93e   :  { %v431_v4 = vpop.f32.mrb[2].mxu1 }
 0x93f   :  { %v432_v6 = vadd.f32 %v431_v4, %v359_v3  ;;  %v993_v8 = vpop.f32.mrb[3].mxu1 }
 0x941   :  { %1121 = vtanh.f32 %v432_v6  ;;  %v901_v10 = vmul.f32 -1.442695, %v432_v6 }
 0x943   :  { %1123 = vpow2.f32 %v901_v10 }
 0x94b   :  { %v1122_v9 = vpop.eup %1121 }
 0x94c   :  { %444 = vrot.lane.b32.xlu1 %v1122_v9, %s1240_s1 }
 0x94d   :  { %v1124_v11 = vpop.eup %1123 }
 0x94e   :  { %v438_v12 = vadd.f32 1.0, %v1124_v11 }
 0x950   :  { %1125 = vrcp.f32 %v438_v12 }
 0x95a   :  { %v1126_v13 = vpop.eup %1125 }
 0x95b   :  { %v442_v16 = vmul.f32 %v1126_v13, %v351_v60 }
 0x9be   :  { %v445_v14 = vpop.permute.xlu1 %444 }
 0x9bf   :  { %v447_v15 = vmul.f32 %v1126_v13, %v445_v14 }
 0x9c1   :  { %449 = vrot.lane.b32.xlu0 %v447_v15, %s1241_s6 }
 0xa33   :  { %v450_v17 = vpop.permute.xlu0 %449 }
 0xa34   :  { %v452_v18 = vadd.f32 %v450_v17, %v442_v16 }
 0xa36   :  { %1127 = vtanh.f32 %v452_v18 }
 0xa40   :  { %v1128_v19 = vpop.eup %1127 }
 0xa41   :  { %455 = vrot.lane.b32.xlu1 %v1128_v19, %s1240_s1 }
 0xab3   :  { %v456_v20 = vpop.permute.xlu1 %455 }
 0xab4   :  { %v458_v21 = vmul.f32 %v1126_v13, %v456_v20  ;;  %v763_v13 = vld [vmem:[#allocation4 + $0x38] sm:$0xff] }
 0xab6   :  { %462 = vrot.lane.b32.xlu0 %v458_v21, %s1241_s6 }
 0xb28   :  { %v463_v22 = vpop.permute.xlu0 %462 }
 0xb29   :  { %1003 = vmatmul.mubr.msk.f32.vlgmr.msra.gmra.mrb[4].mxu0 %vm44_vm0, %v463_v22 }
 0xb2a   :  { %1076 = vmatpush3.bf16.msra.mxu0 %v1293_v5  ;;  %1024 = vmatprep.mubr.msk.f32.mxu0 %vm1238_vm1, %v1239_v1 }
 0xb2b   :  { %1077 = vmatprep.subr.bf16.mxu0 %v1237_v0 }
 0xb2e   :  { %1079 = vmatpush3.bf16.msra.mxu0 %v1296_v7 }
 0xbfc   :  { %v532_v24 = vpop.f32.mrb[4].mxu0 }
 0xbfd   :  { %v533_v25 = vadd.f32 %v532_v24, %v460_v23  ;;  %v1004_v26 = vpop.f32.mrb[5].mxu0 }
 0xbff   :  { %1129 = vtanh.f32 %v533_v25  ;;  %v903_v28 = vmul.f32 -1.442695, %v533_v25 }
 0xc01   :  { %1131 = vpow2.f32 %v903_v28 }
 0xc09   :  { %v1130_v27 = vpop.eup %1129 }
 0xc0a   :  { %545 = vrot.lane.b32.xlu1 %v1130_v27, %s1240_s1 }
 0xc0b   :  { %v1132_v29 = vpop.eup %1131 }
 0xc0c   :  { %v539_v30 = vadd.f32 1.0, %v1132_v29 }
 0xc0e   :  { %1133 = vrcp.f32 %v539_v30 }
 0xc18   :  { %v1134_v31 = vpop.eup %1133 }
 0xc19   :  { %v543_v34 = vmul.f32 %v1134_v31, %v452_v18 }
 0xc7c   :  { %v546_v32 = vpop.permute.xlu1 %545 }
 0xc7d   :  { %v548_v33 = vmul.f32 %v1134_v31, %v546_v32 }
 0xc7f   :  { %550 = vrot.lane.b32.xlu0 %v548_v33, %s1241_s6 }
 0xcf1   :  { %v551_v35 = vpop.permute.xlu0 %550 }
 0xcf2   :  { %v553_v36 = vadd.f32 %v551_v35, %v543_v34 }
 0xcf4   :  { %1135 = vtanh.f32 %v553_v36 }
 0xcfe   :  { %v1136_v37 = vpop.eup %1135 }
 0xcff   :  { %556 = vrot.lane.b32.xlu1 %v1136_v37, %s1240_s1 }
 0xd71   :  { %v557_v38 = vpop.permute.xlu1 %556 }
 0xd72   :  { %v559_v39 = vmul.f32 %v1134_v31, %v557_v38 }
 0xd74   :  { %563 = vrot.lane.b32.xlu0 %v559_v39, %s1241_s6 }
 0xde6   :  { %v564_v40 = vpop.permute.xlu0 %563 }
 0xde7   :  { %1014 = vmatmul.mubr.msk.f32.vlgmr.msra.gmra.mrb[4].mxu1 %vm44_vm0, %v564_v40 }
 0xde8   :  { %1082 = vmatpush3.bf16.msra.mxu1 %v1293_v5  ;;  %1035 = vmatprep.mubr.msk.f32.mxu1 %vm1238_vm1, %v1239_v1 }
 0xde9   :  { %1083 = vmatprep.subr.bf16.mxu1 %v1237_v0 }
 0xdec   :  { %1085 = vmatpush3.bf16.msra.mxu1 %v1296_v7 }
 0xeba   :  { %v633_v42 = vpop.f32.mrb[4].mxu1 }
 0xebb   :  { %v634_v43 = vadd.f32 %v633_v42, %v561_v41  ;;  %v1015_v44 = vpop.f32.mrb[5].mxu1 }
 0xebd   :  { %1137 = vtanh.f32 %v634_v43  ;;  %v905_v46 = vmul.f32 -1.442695, %v634_v43 }
 0xebf   :  { %1139 = vpow2.f32 %v905_v46 }
 0xec7   :  { %v1138_v45 = vpop.eup %1137 }
 0xec8   :  { %646 = vrot.lane.b32.xlu1 %v1138_v45, %s1240_s1 }
 0xec9   :  { %v1140_v47 = vpop.eup %1139 }
 0xeca   :  { %v640_v48 = vadd.f32 1.0, %v1140_v47 }
 0xecc   :  { %1141 = vrcp.f32 %v640_v48 }
 0xed6   :  { %v1142_v5 = vpop.eup %1141 }
 0xed7   :  { %v644_v0 = vmul.f32 %v1142_v5, %v553_v36 }
 0xf3a   :  { %v647_v49 = vpop.permute.xlu1 %646 }
 0xf3b   :  { %v649_v1 = vmul.f32 %v1142_v5, %v647_v49 }
 0xf3d   :  { %651 = vrot.lane.b32.xlu0 %v649_v1, %s1241_s6 }
 0xfaf   :  { %v652_v7 = vpop.permute.xlu0 %651 }
 0xfb0   :  { %v654_v50 = vadd.f32 %v652_v7, %v644_v0 }
 0xfb2   :  { %1143 = vtanh.f32 %v654_v50 }
 0xfbc   :  { %v1144_v51 = vpop.eup %1143 }
 0xfbd   :  { %657 = vrot.lane.b32.xlu1 %v1144_v51, %s1240_s1 }
0x102f   :  { %v658_v52 = vpop.permute.xlu1 %657 }
0x1030   :  { %v660_v53 = vmul.f32 %v1142_v5, %v658_v52 }
0x1032   :  { %664 = vrot.lane.b32.xlu0 %v660_v53, %s1241_s6 }
0x10a4   :  { %v665_v54 = vpop.permute.xlu0 %664 }
0x10a5   :  { %1025 = vmatmul.mubr.msk.f32.vlgmr.msra.gmra.mrb[6].mxu0 %vm44_vm0, %v665_v54 }
0x1178   :  { %v734_v56 = vpop.f32.mrb[6].mxu0 }
0x1179   :  { %v735_v57 = vadd.f32 %v734_v56, %v662_v55  ;;  %v1026_v58 = vpop.f32.mrb[7].mxu0 }
0x117b   :  { %1145 = vtanh.f32 %v735_v57  ;;  %v907_v60 = vmul.f32 -1.442695, %v735_v57 }
0x117d   :  { %1147 = vpow2.f32 %v907_v60 }
0x1185   :  { %v1146_v59 = vpop.eup %1145 }
0x1186   :  { %747 = vrot.lane.b32.xlu1 %v1146_v59, %s1240_s1 }
0x1187   :  { %v1148_v61 = vpop.eup %1147 }
0x1188   :  { %v741_v62 = vadd.f32 1.0, %v1148_v61 }
0x118a   :  { %1149 = vrcp.f32 %v741_v62 }
0x1194   :  { %v1150_v63 = vpop.eup %1149 }
0x1195   :  { %v745_v4 = vmul.f32 %v1150_v63, %v654_v50 }
0x11f8   :  { %v748_v2 = vpop.permute.xlu1 %747 }
0x11f9   :  { %v750_v3 = vmul.f32 %v1150_v63, %v748_v2 }
0x11fb   :  { %752 = vrot.lane.b32.xlu0 %v750_v3, %s1241_s6 }
0x126d   :  { %v753_v6 = vpop.permute.xlu0 %752 }
0x126e   :  { %v755_v8 = vadd.f32 %v753_v6, %v745_v4 }
0x1270   :  { %1151 = vtanh.f32 %v755_v8 }
0x127a   :  { %v1152_v9 = vpop.eup %1151 }
0x127b   :  { %758 = vrot.lane.b32.xlu1 %v1152_v9, %s1240_s1 }
0x12ed   :  { %v759_v10 = vpop.permute.xlu1 %758 }
0x12ee   :  { %v761_v11 = vmul.f32 %v1150_v63, %v759_v10 }
0x12f0   :  { %765 = vrot.lane.b32.xlu0 %v761_v11, %s1241_s6 }
0x1362   :  { %v766_v12 = vpop.permute.xlu0 %765 }
0x1363   :  { %1036 = vmatmul.mubr.msk.f32.vlgmr.msra.gmra.mrb[6].mxu1 %vm44_vm0, %v766_v12 }
0x1436   :  { %v835_v14 = vpop.f32.mrb[6].mxu1 }
0x1437   :  { %v836_v15 = vadd.f32 %v835_v14, %v763_v13  ;;  %v1037_v16 = vpop.f32.mrb[7].mxu1 }
0x1439   :  { %1153 = vtanh.f32 %v836_v15  ;;  %v909_v18 = vmul.f32 -1.442695, %v836_v15 }
0x143b   :  { %1155 = vpow2.f32 %v909_v18 }
0x1443   :  { %v1154_v17 = vpop.eup %1153 }
0x1444   :  { %848 = vrot.lane.b32.xlu1 %v1154_v17, %s1240_s1 }
0x1445   :  { %v1156_v19 = vpop.eup %1155 }
0x1446   :  { %v842_v20 = vadd.f32 1.0, %v1156_v19 }
0x1448   :  { %1157 = vrcp.f32 %v842_v20 }
0x1452   :  { %v1158_v21 = vpop.eup %1157 }
0x1453   :  { %v846_v24 = vmul.f32 %v1158_v21, %v755_v8 }
0x14b6   :  { %v849_v22 = vpop.permute.xlu1 %848 }
0x14b7   :  { %v851_v23 = vmul.f32 %v1158_v21, %v849_v22 }
0x14b9   :  { %853 = vrot.lane.b32.xlu0 %v851_v23, %s1241_s6 }
0x152b   :  { %v854_v25 = vpop.permute.xlu0 %853 }
0x152c   :  { %v856_v26 = vadd.f32 %v854_v25, %v846_v24 }
0x152e   :  { %1159 = vtanh.f32 %v856_v26 }
0x1538   :  { %v1160_v27 = vpop.eup %1159 }
0x1539   :  { %859 = vrot.lane.b32.xlu1 %v1160_v27, %s1240_s1 }
0x153d   :  { %869 = vrot.lane.b32.xlu1 %v856_v26, %s1242_s7 }
0x15ab   :  { %v860_v28 = vpop.permute.xlu1 %859 }
0x15ac   :  { %v862_v29 = vmul.f32 %v1158_v21, %v860_v28 }
0x15ae   :  { %864 = vrot.lane.b32.xlu0 %v862_v29, %s1241_s6 }
0x15af   :  { %v870_v30 = vpop.permute.xlu1 %869 }
0x15b0   :  { %872 = vst.msk [vmem:[#allocation3] sm:$0xff] %vm44_vm0, %v870_v30 }
0x1620   :  { %v865_v31 = vpop.permute.xlu0 %864 }
0x1621   :  { %867 = vst.msk [vmem:[#allocation2] sm:$0xff] %vm44_vm0, %v865_v31 }
0x1628   :  { %v876_v32 = vld [vmem:[#allocation2] sm:$0xff] }
0x1629   :  { %877 = vst.msk [vmem:[#allocation9] sm:$0xff] %vm44_vm0, %v876_v32 }
0x162a   :  { %1216 = shalt.err (!%p1213_p6)
}
0x162b   :  { %s1217_s13 = scalar_lea.hbm %s1397_s2, 128 }
0x162c   :  { %p1218_p7 = scmp.ne.s32.totalorder %s1397_s2, %s1217_s13  ;;  %p1221_p8 = scmp.lt.u32.totalorder %s1217_s13, %s1397_s2 }
0x162e   :  { %p1223_p9 = pnand %p1221_p8, %p1218_p7 }
0x1630   :  { %1226 = shalt.err (!%p1223_p9)
}
0x1631   :  { %887 = dma.vmem_to_hbm [thread:$0]  %s885_s9, 128, %s1397_s2, [#allocation6]  }
0x1632   :  { %1231 = dma.done.wait [#allocation6], 128  }
0x1633   :  { %1232 = vsyncadd [#allocation6], 4294967168 }
0x1634   :  { %891 = vsyncpa [#allocation5], 1 }
0x1635   :  { %892 = vsyncpa [#allocation8], 1 }
0x1636   :  { %893 = vsyncpa [#allocation6], 1 }

</bundles_post_ra>
